<compile_context>
chip_gen: v5e
topology: v5e:2x2
jax: 0.10.0
libtpu: 0.0.40
codegen_flags: <defaults>
</compile_context>

<pallas_src>
import jax
import jax.numpy as jnp
from jax.experimental import pallas as pl
from jax.experimental.pallas import tpu as pltpu


def marge_kernel(paper_ref, query_ref, w_ref, b_ref, out_ref):
    """One row-tile of: [paper @ W + b , query @ W + b] (feature-axis concat).

    paper_ref / query_ref : (TILE_N, E)   bf16
    w_ref                 : (E, H)        bf16  (grid-resident)
    b_ref                 : (1, H)        f32   (grid-resident)
    out_ref               : (TILE_N, 2H)  f32
    """
    tn = out_ref.shape[0]
    # Fuse the two projections into a single MXU pass: row-stack the tiles.
    x = jnp.concatenate([paper_ref[...], query_ref[...]], axis=0)      # (2*tn, E)
    y = jnp.dot(x, w_ref[...], preferred_element_type=jnp.float32)     # (2*tn, H)
    y = y + b_ref[...]                                                 # implicit (1,H) broadcast
    # Lane-concatenate the two row-halves and issue ONE full-tile store.
    out = jnp.concatenate([y[:tn, :], y[tn:, :]], axis=-1)             # (tn, 2H)
    out_ref[...] = out.astype(out_ref.dtype)
    # TODO(synk): output last dim 2H (=16 here) is lane-sparse (<128 lanes);
    # padding H would change the module's output shape, so it is left as-is.


def _time_distributed_flatten(x):
    """Mimic TimeDistributed: if ndim > 2, flatten to (-1, last_dim)."""
    if x.ndim <= 2:
        return x, None
    return x.reshape(-1, x.shape[-1]), x.shape[:-1]


def _round_up(x, m):
    return (x + m - 1) // m * m


def _choose_row_tile(n, tile_n):
    """16-aligned (bf16 sublane pairs) row tile; >=2 grid steps for megacore."""
    if n <= 16:
        return _round_up(max(n, 1), 8)
    tn = min(tile_n, _round_up((n + 1) // 2, 16))
    return max(tn, 16)


def marge_layer_forward(paper_embedding, query_embedding, weight, bias,
                        *, tile_n=4096, compute_dtype=jnp.bfloat16):
    """paper_embedding: (1, N, E) (or (1, B, T, E)); query_embedding: (N, E) or
    (B, T, E); weight: (H, E) (PyTorch nn.Linear layout); bias: (H,)."""
    paper = jnp.squeeze(paper_embedding, axis=0)
    paper2d, paper_lead = _time_distributed_flatten(paper)
    query2d, query_lead = _time_distributed_flatten(query_embedding)

    n, e = paper2d.shape
    n_q, e_q = query2d.shape
    assert n == n_q and e == e_q, "paper/query flattened shapes must match"
    if paper_lead is not None and query_lead is not None:
        assert paper_lead == query_lead, "leading shapes must match for concat"
    # Restore leading dims from whichever input carried them (fixes the case
    # where only query_embedding is 3-D).
    lead = paper_lead if paper_lead is not None else query_lead

    h = weight.shape[0]

    # bf16 activations/weight (MXU-native, half HBM read traffic); f32 bias,
    # f32 accumulation & output (matches PyTorch output dtype).
    paper_c = paper2d.astype(compute_dtype)
    query_c = query2d.astype(compute_dtype)
    w_t = jnp.asarray(weight, compute_dtype).T              # (E, H)
    b2d = jnp.asarray(bias, jnp.float32).reshape(1, h)      # (1, H)

    tn = _choose_row_tile(n, tile_n)
    grid = (pl.cdiv(n, tn),)

    itemsize = jnp.dtype(compute_dtype).itemsize
    cost = pl.CostEstimate(
        flops=2 * (2 * n) * e * h,          # one (2n,e)x(e,h) matmul per call
        transcendentals=0,
        bytes_accessed=(paper_c.size + query_c.size + w_t.size) * itemsize
                       + b2d.size * 4 + n * 2 * h * 4,
    )

    out = pl.pallas_call(
        marge_kernel,
        out_shape=jax.ShapeDtypeStruct((n, 2 * h), jnp.float32),
        grid=grid,
        in_specs=[
            pl.BlockSpec((tn, e), lambda i: (i, 0)),
            pl.BlockSpec((tn, e), lambda i: (i, 0)),
            pl.BlockSpec((e, h), lambda i: (0, 0)),   # weight: VMEM-resident
            pl.BlockSpec((1, h), lambda i: (0, 0)),   # bias:   VMEM-resident
        ],
        out_specs=pl.BlockSpec((tn, 2 * h), lambda i: (i, 0)),
        compiler_params=pltpu.CompilerParams(
            dimension_semantics=("parallel",),        # megacore split on v7x
            vmem_limit_bytes=32 * 1024 * 1024,        # budgeted for v7x 64 MiB
        ),
        cost_estimate=cost,
    )(paper_c, query_c, w_t, b2d)

    if lead is not None:
        out = out.reshape(lead + (2 * h,))
    return out


if __name__ == "__main__":
    # Small shapes consistent with the module:
    #   embedding_dim E = 32, query_dim Q = 16 (H = Q // 2 = 8), N = 8 rows.
    E, Q, N = 32, 16, 8
    H = Q // 2

    key = jax.random.PRNGKey(0)
    k1, k2, k3, k4 = jax.random.split(key, 4)

    paper_embedding = jax.random.normal(k1, (1, N, E), dtype=jnp.float32)
    # query_embedding last dim must be E because the forward (as written)
    # routes it through embedding_projection as well.
    query_embedding = jax.random.normal(k2, (N, E), dtype=jnp.float32)

    # Deterministic synthetic nn.Linear(E, H) parameters (PyTorch layout).
    bound = 1.0 / jnp.sqrt(E)
    weight = jax.random.uniform(k3, (H, E), minval=-bound, maxval=bound,
                                dtype=jnp.float32)
    bias = jax.random.uniform(k4, (H,), minval=-bound, maxval=bound,
                              dtype=jnp.float32)
    # NOTE: query_projection parameters exist in __init__ but are unused in
    # forward, so they are not materialized here.

    out = marge_layer_forward(paper_embedding, query_embedding, weight, bias)
    out = jax.block_until_ready(out)

    # Reference with identical bf16 input casting and f32 accumulation.
    p_bf = jnp.squeeze(paper_embedding, 0).astype(jnp.bfloat16)
    q_bf = query_embedding.astype(jnp.bfloat16)
    w_bf = weight.astype(jnp.bfloat16)
    ref_p = jnp.dot(p_bf, w_bf.T, preferred_element_type=jnp.float32) + bias
    ref_q = jnp.dot(q_bf, w_bf.T, preferred_element_type=jnp.float32) + bias
    ref = jnp.concatenate([ref_p, ref_q], axis=-1)

    assert out.shape == (N, Q), out.shape
    assert jnp.allclose(out, ref, atol=1e-3, rtol=1e-3), "mismatch vs reference"

    print("KERNEL_OK")
</pallas_src>

<mosaic_0001>
module attributes {stable_mosaic.version = 11 : i64} {
  func.func @marge_kernel(%arg0: i32, %arg1: memref<8x32xbf16, #tpu.memory_space<vmem>>, %arg2: memref<8x32xbf16, #tpu.memory_space<vmem>>, %arg3: memref<32x8xbf16, #tpu.memory_space<vmem>>, %arg4: memref<1x8xf32, #tpu.memory_space<vmem>>, %arg5: memref<8x16xf32, #tpu.memory_space<vmem>>) attributes {dimension_semantics = [#tpu.dimension_semantics<parallel>], iteration_bounds = array<i64: 1>, scalar_prefetch = 0 : i64, scratch_operands = 0 : i64, tpu.core_type = #tpu.core_type<tc>, window_params = [{transform_indices = @transform_0, window_bounds = array<i64: 8, 32>}, {transform_indices = @transform_1, window_bounds = array<i64: 8, 32>}, {pipeline_mode = #tpu.pipeline_mode<synchronous>, transform_indices = @transform_2, window_bounds = array<i64: 32, 8>}, {pipeline_mode = #tpu.pipeline_mode<synchronous>, transform_indices = @transform_3, window_bounds = array<i64: 1, 8>}, {transform_indices = @transform_4, window_bounds = array<i64: 8, 16>}]} {
    %c0 = arith.constant 0 : index
    %c0_0 = arith.constant 0 : index
    %0 = vector.load %arg1[%c0, %c0_0] : memref<8x32xbf16, #tpu.memory_space<vmem>>, vector<8x32xbf16>
    %c0_1 = arith.constant 0 : index
    %c0_2 = arith.constant 0 : index
    %1 = vector.load %arg2[%c0_1, %c0_2] : memref<8x32xbf16, #tpu.memory_space<vmem>>, vector<8x32xbf16>
    %2 = tpu.concatenate %0, %1 in 0 : vector<8x32xbf16>, vector<8x32xbf16> -> vector<16x32xbf16>
    %c0_3 = arith.constant 0 : index
    %c0_4 = arith.constant 0 : index
    %3 = vector.load %arg3[%c0_3, %c0_4] : memref<32x8xbf16, #tpu.memory_space<vmem>>, vector<32x8xbf16>
    %cst = arith.constant dense<0.000000e+00> : vector<16x8xf32>
    %4 = tpu.matmul %2, %3, %cst {dimension_numbers = #tpu.dot_dimension_numbers<[1], [0], [0], [1], [0, 0, 1, 1], [], []>} : vector<16x32xbf16>, vector<32x8xbf16>, vector<16x8xf32> -> vector<16x8xf32>
    %c0_5 = arith.constant 0 : index
    %c0_6 = arith.constant 0 : index
    %5 = vector.load %arg4[%c0_5, %c0_6] : memref<1x8xf32, #tpu.memory_space<vmem>>, vector<1x8xf32>
    %6 = vector.broadcast %5 : vector<1x8xf32> to vector<16x8xf32>
    %7 = arith.addf %4, %6 : vector<16x8xf32>
    %8 = vector.extract_strided_slice %7 {offsets = [0, 0], sizes = [8, 8], strides = [1, 1]} : vector<16x8xf32> to vector<8x8xf32>
    %9 = vector.extract_strided_slice %7 {offsets = [8, 0], sizes = [8, 8], strides = [1, 1]} : vector<16x8xf32> to vector<8x8xf32>
    %10 = tpu.concatenate %8, %9 in 1 : vector<8x8xf32>, vector<8x8xf32> -> vector<8x16xf32>
    %c0_7 = arith.constant 0 : index
    %c0_8 = arith.constant 0 : index
    %11 = vector.load %arg5[%c0_7, %c0_8] : memref<8x16xf32, #tpu.memory_space<vmem>>, vector<8x16xf32>
    tpu.vector_store %arg5[%c0_7, %c0_8], %10 {strides = array<i32>} : memref<8x16xf32, #tpu.memory_space<vmem>>, vector<8x16xf32>,
    return
  }
  func.func @transform_0(%arg0: i32) -> (i32, i32) {
    %c0_i32 = arith.constant 0 : i32
    %c0_i32_0 = arith.constant 0 : i32
    return %arg0, %c0_i32 : i32, i32
  }
  func.func @transform_1(%arg0: i32) -> (i32, i32) {
    %c0_i32 = arith.constant 0 : i32
    %c0_i32_0 = arith.constant 0 : i32
    return %arg0, %c0_i32 : i32, i32
  }
  func.func @transform_2(%arg0: i32) -> (i32, i32) {
    %c0_i32 = arith.constant 0 : i32
    %c0_i32_0 = arith.constant 0 : i32
    %c0_i32_1 = arith.constant 0 : i32
    return %c0_i32, %c0_i32_0 : i32, i32
  }
  func.func @transform_3(%arg0: i32) -> (i32, i32) {
    %c0_i32 = arith.constant 0 : i32
    %c0_i32_0 = arith.constant 0 : i32
    %c0_i32_1 = arith.constant 0 : i32
    return %c0_i32, %c0_i32_0 : i32, i32
  }
  func.func @transform_4(%arg0: i32) -> (i32, i32) {
    %c0_i32 = arith.constant 0 : i32
    %c0_i32_0 = arith.constant 0 : i32
    return %arg0, %c0_i32 : i32, i32
  }
}

</mosaic_0001>

<bundles_post_ra>
// kernel: tpu_custom_call.1
= control target key start
LH: loop header
LB: loop body
LE: loop exit
PB: predicated region body
PF: predicated region fallthrough
CT: control target
= control target key end

     0   :  { %s174_s0 = inlined_call_operand.vmem [shape: bf16[8,32], index: 0, kind: input, shape index: {}]   ;;  %s175_s1 = inlined_call_operand.vmem [shape: bf16[8,32], index: 1, kind: input, shape index: {}]   ;;  %s176_s2 = inlined_call_operand.vmem [shape: bf16[32,8], index: 2, kind: input, shape index: {}]   ;;  %s177_s3 = inlined_call_operand.vmem [shape: f32[1,8], index: 3, kind: input, shape index: {}]   ;;  %s178_s4 = inlined_call_operand.hbm [shape: f32[8,16], index: 4, kind: output, shape index: {}]  }
   0x1   :  { %v99_v0 = vld [vmem:[%s176_s2 + $0x8] sm:$0xff]  ;;  %v20_v1 = vld [vmem:[%s175_s1] sm:$0xf] }
   0x2   :  { %57 = vmatpush.bf16.msra.mxu0 %v99_v0  ;;  %v98_v2 = vld [vmem:[%s176_s2] sm:$0xff]  ;;  %v22_v3 = vunpack.c.l.b16 %v20_v1 }
   0x3   :  { %9 = vsyncpa [#allocation3], 0  ;;  %v19_v4 = vld [vmem:[%s174_s0] sm:$0xf]  ;;  %vm24_vm0 = vcmask 1043456   ;;  %vm48_vm1 = vcmask 261120  }
   0x4   :  { %v23_v5 = vpack.c.b16 %v22_v3, %v22_v3  ;;  %v102_v7 = vld [vmem:[%s177_s3] ss:$0 sm:$0xff]  ;;  %s129_s1 = smov 8   ;;  %s130_s2 = smov [#allocation2]   ;;  %vm69_vm2 = vcmask 64512   ;;  %vm71_vm3 = vcmask 130048  }
   0x5   :  { %s78_s25 = sshll.u32 %s130_s2, 4  ;;  %s80_s27 = sshll.u32 %s178_s4, 4  ;;  %s79_s25 = int_to_ptr.vmem [resolvable:$true] %s78_s25  ;;  %s81_s27 = int_to_ptr.hbm [resolvable:$true] %s80_s27 }
   0x6   :  { %58 = vmatpush.bf16.msra.mxu0 %v98_v2  ;;  %v27_v6 = vsel %vm24_vm0, %v19_v4, %v23_v5 }
   0x9   :  { %97 = vmatmul.msk.bf16.vlgmr.msra.gmra.mxu0 %vm48_vm1, %v27_v6 }
  0x86   :  { %v60_v8 = vpop.f32.mrf.mxu0 }
  0x87   :  { %v61_v9 = vadd.f32 %v102_v7, %v60_v8 }
  0x8e   :  { %v62_v10 = vpop.f32.mrf.mxu0 }
  0x8f   :  { %v63_v11 = vadd.f32 %v102_v7, %v62_v10 }
  0x91   :  { %66 = vrot.lane.b32.xlu0 %v63_v11, %s129_s1 }
 0x103   :  { %v67_v12 = vpop.permute.xlu0 %66 }
 0x104   :  { %v70_v13 = vsel %vm69_vm2, %v61_v9, %v67_v12 }
 0x105   :  { %72 = vst.msk [vmem:[#allocation2] sm:$0xff] %vm71_vm3, %v70_v13 }
 0x106   :  { %83 = dma.vmem_to_hbm [thread:$0]  %s79_s25, 128, %s81_s27, [#allocation3]  }
 0x107   :  { %127 = dma.done.wait [#allocation3], 128  }
 0x108   :  { %128 = vsyncadd [#allocation3], 4294967168 }
 0x109   :  { %88 = vsyncpa [#allocation3], 1 }

</bundles_post_ra>
